<compile_context>
chip_gen: v6e
topology: v6e:2x2x1
jax: 0.10.0
libtpu: 0.0.40
codegen_flags: <defaults>
</compile_context>

<pallas_src>
import jax
import jax.numpy as jnp
from jax import lax
from jax.experimental import pallas as pl
from jax.experimental.pallas import tpu as pltpu


def _round_up(x, m):
    return (x + m - 1) // m * m


def _vmem_capacity_bytes():
    try:
        info = pltpu.get_tpu_info()
        cap = getattr(info, "vmem_capacity_bytes", None)
        if cap:
            return int(cap)
    except Exception:
        pass
    return 64 * 1024 * 1024  # conservative default (v7x per-TC)


# ---------------- pass 1: per-channel sum / sum-of-squares of the conv output ----------------

def _stats_kernel(patches_ref, w_ref, sum_ref, sumsq_ref):
    i = pl.program_id(1)
    y = jnp.dot(patches_ref[...], w_ref[...], preferred_element_type=jnp.float32)

    @pl.when(i == 0)
    def _init():
        sum_ref[...] = jnp.zeros_like(sum_ref)
        sumsq_ref[...] = jnp.zeros_like(sumsq_ref)

    sum_ref[...] += jnp.sum(y, axis=0, keepdims=True)
    sumsq_ref[...] += jnp.sum(y * y, axis=0, keepdims=True)


def _stats_save_y_kernel(patches_ref, w_ref, sum_ref, sumsq_ref, y_ref):
    i = pl.program_id(1)
    y = jnp.dot(patches_ref[...], w_ref[...], preferred_element_type=jnp.float32)

    @pl.when(i == 0)
    def _init():
        sum_ref[...] = jnp.zeros_like(sum_ref)
        sumsq_ref[...] = jnp.zeros_like(sumsq_ref)

    sum_ref[...] += jnp.sum(y, axis=0, keepdims=True)
    sumsq_ref[...] += jnp.sum(y * y, axis=0, keepdims=True)
    y_ref[...] = y.astype(y_ref.dtype)


# ---------------- pass 2: fused BN affine + LeakyReLU ----------------

def _norm_recompute_kernel(neg_slope, c_store):
    def kernel(patches_ref, w_ref, scale_ref, shift_ref, o_ref):
        y = jnp.dot(patches_ref[...], w_ref[...], preferred_element_type=jnp.float32)
        z = y * scale_ref[...] + shift_ref[...]
        z = jnp.where(z >= 0, z, neg_slope * z)
        o_ref[...] = z[:, :c_store].astype(o_ref.dtype)
    return kernel


def _norm_elementwise_kernel(neg_slope, c_store):
    def kernel(y_ref, scale_ref, shift_ref, o_ref):
        z = y_ref[...].astype(jnp.float32) * scale_ref[...] + shift_ref[...]
        z = jnp.where(z >= 0, z, neg_slope * z)
        o_ref[...] = z[:, :c_store].astype(o_ref.dtype)
    return kernel


# ---------------- wrapper ----------------

def down_block_forward(x_nchw, w, b, gamma, beta, *, eps=1e-5, neg_slope=0.2):
    """x_nchw: (N, Cin, H, W); w: (Cout, Cin, 3, 3); b/gamma/beta: (Cout,)."""
    N, Cin, H, W = x_nchw.shape
    Cout = w.shape[0]
    Ho = (H + 2 - 3) // 2 + 1
    Wo = (W + 2 - 3) // 2 + 1
    M = N * Ho * Wo
    K = 9 * Cin

    Cpad = _round_up(Cout, 128)     # matmul RHS / lane width
    Kpad = _round_up(K, 16)         # bf16 sublane pack only (memory-bound stream)
    # For small Cout the 128-lane output pad writes up to 16-64x the real bytes; store at
    # the true width (masked vst) instead.  Lane-dense pad only for larger Cout.
    Cstore = Cout if Cout <= 32 else _round_up(Cout, 128)

    # --- im2col in bf16 (cast BEFORE pad/tap-stack) ---
    x = jnp.transpose(x_nchw, (0, 2, 3, 1)).astype(jnp.bfloat16)       # NHWC bf16
    xp = jnp.pad(x, ((0, 0), (1, 1), (1, 1), (0, 0)))
    taps = [xp[:, kh:kh + 2 * Ho:2, kw:kw + 2 * Wo:2, :]
            for kh in range(3) for kw in range(3)]                     # 9 x (N,Ho,Wo,Cin)
    patches = jnp.stack(taps, axis=3).reshape(M, K)

    # --- generation-aware VMEM budget / tile sizing ---
    vmem_cap = _vmem_capacity_bytes()                    # 128 MiB v5e/v6e, 64 MiB v7x
    vmem_limit = min(int(0.75 * vmem_cap), 100 * 1024 * 1024)
    budget = vmem_limit - 4 * 1024 * 1024

    save_y = Kpad > 2 * Cpad      # reload y cheaper than re-streaming patches + re-matmul

    w_res = 2 * (Kpad * Cpad * 2)                        # resident weight tile, 2 buffers
    vec_res = 8 * (Cpad * 4)                             # scale/shift/partials (generous)

    if save_y:
        p1_row = 2 * (Kpad * 2) + 2 * (Cpad * 2)         # patches in + y out (bf16, 2 bufs)
        p2_row = 2 * (Cpad * 2) + 2 * (Cstore * 2)       # y in + bf16 out
        p2_res = vec_res
    else:
        p1_row = 2 * (Kpad * 2)
        p2_row = 2 * (Kpad * 2) + 2 * (Cstore * 2)
        p2_res = w_res + vec_res
    p1_res = w_res + vec_res

    def rows_for(row_bytes, res_bytes):
        return max(16, ((budget - res_bytes) // row_bytes // 16) * 16)

    TM1_max = rows_for(p1_row, p1_res)
    TM2 = min(rows_for(p2_row, p2_res), TM1_max, 4096, _round_up(M, 16))
    k1 = max(1, min(TM1_max // TM2, 8,
                    (_round_up(M, 16) + 2 * TM2 - 1) // (2 * TM2)))
    TM1 = k1 * TM2                                       # pass-1 tile, multiple of TM2
    Mpad = _round_up(M, 2 * TM1)                         # 2-way (dual-TC) x TM1 super-tile
    n1_half = Mpad // (2 * TM1)
    n2 = Mpad // TM2

    patches = jnp.pad(patches, ((0, Mpad - M), (0, Kpad - K)))

    # weight (Cout,Cin,3,3) -> (kh,kw,Cin,Cout) -> (K,Cout) -> padded bf16 (Kpad,Cpad)
    wmat = jnp.transpose(w, (2, 3, 1, 0)).reshape(K, Cout).astype(jnp.float32)
    wmat = jnp.pad(wmat, ((0, Kpad - K), (0, Cpad - Cout))).astype(jnp.bfloat16)

    gamma_p = jnp.pad(gamma.astype(jnp.float32), (0, Cpad - Cout)).reshape(1, Cpad)
    beta_p = jnp.pad(beta.astype(jnp.float32), (0, Cpad - Cout)).reshape(1, Cpad)
    # NOTE: the conv bias `b` cancels exactly against the BN batch-mean subtraction:
    #   z = (conv + b - (mean_conv + b)) * scale + beta = (conv - mean_conv) * scale + beta
    # so it is intentionally unused (matches training-mode forward semantics).
    del b

    # ---- pass 1: partial per-channel sum / sumsq, split across 2 cores ----
    patches1_spec = pl.BlockSpec((TM1, Kpad), lambda c, i: (c * n1_half + i, 0))
    w1_spec = pl.BlockSpec((Kpad, Cpad), lambda c, i: (0, 0))
    part_spec = pl.BlockSpec((None, 1, Cpad), lambda c, i: (c, 0, 0))

    if save_y:
        out_shapes1 = (jax.ShapeDtypeStruct((2, 1, Cpad), jnp.float32),
                       jax.ShapeDtypeStruct((2, 1, Cpad), jnp.float32),
                       jax.ShapeDtypeStruct((Mpad, Cpad), jnp.bfloat16))
        out_specs1 = (part_spec, part_spec,
                      pl.BlockSpec((TM1, Cpad), lambda c, i: (c * n1_half + i, 0)))
        kernel1 = _stats_save_y_kernel
    else:
        out_shapes1 = (jax.ShapeDtypeStruct((2, 1, Cpad), jnp.float32),
                       jax.ShapeDtypeStruct((2, 1, Cpad), jnp.float32))
        out_specs1 = (part_spec, part_spec)
        kernel1 = _stats_kernel

    res1 = pl.pallas_call(
        kernel1,
        out_shape=out_shapes1,
        grid=(2, n1_half),
        in_specs=[patches1_spec, w1_spec],
        out_specs=out_specs1,
        compiler_params=pltpu.CompilerParams(
            dimension_semantics=("parallel", "arbitrary"),
            vmem_limit_bytes=vmem_limit),
    )(patches, wmat)
    if save_y:
        s_sum, s_sq, y_bf16 = res1
    else:
        s_sum, s_sq = res1
        y_bf16 = None

    # reduce the 2 per-core partials; BN training-mode stats (biased variance) in f32.
    s_sum = jnp.sum(s_sum, axis=0)                      # (1, Cpad)
    s_sq = jnp.sum(s_sq, axis=0)                        # (1, Cpad)
    mean_c = s_sum / M
    # NOTE: E[y^2]-E[y]^2 in f32 can cancel for |mean|>>std; bias is already excluded
    # (mean ~ 0 for conv w/o bias) which keeps this well-conditioned for typical inputs.
    var_c = jnp.maximum(s_sq / M - mean_c * mean_c, 0.0)
    inv = lax.rsqrt(var_c + eps)
    scale = gamma_p * inv                               # (1, Cpad)
    shift = beta_p - mean_c * scale                     # (1, Cpad)

    # ---- pass 2: fused BN affine + LeakyReLU (recompute conv or reload y) ----
    vec2_spec = pl.BlockSpec((1, Cpad), lambda i: (0, 0))
    out2_spec = pl.BlockSpec((TM2, Cstore), lambda i: (i, 0))
    out2_shape = jax.ShapeDtypeStruct((Mpad, Cstore), jnp.bfloat16)
    cparams2 = pltpu.CompilerParams(dimension_semantics=("parallel",),
                                    vmem_limit_bytes=vmem_limit)

    if save_y:
        out = pl.pallas_call(
            _norm_elementwise_kernel(neg_slope, Cstore),
            out_shape=out2_shape,
            grid=(n2,),
            in_specs=[pl.BlockSpec((TM2, Cpad), lambda i: (i, 0)),
                      vec2_spec, vec2_spec],
            out_specs=out2_spec,
            compiler_params=cparams2,
        )(y_bf16, scale, shift)
    else:
        out = pl.pallas_call(
            _norm_recompute_kernel(neg_slope, Cstore),
            out_shape=out2_shape,
            grid=(n2,),
            in_specs=[pl.BlockSpec((TM2, Kpad), lambda i: (i, 0)),
                      pl.BlockSpec((Kpad, Cpad), lambda i: (0, 0)),
                      vec2_spec, vec2_spec],
            out_specs=out2_spec,
            compiler_params=cparams2,
        )(patches, wmat, scale, shift)

    out = out[:M, :Cout].astype(jnp.float32).reshape(N, Ho, Wo, Cout)
    return jnp.transpose(out, (0, 3, 1, 2))             # back to NCHW


def _reference(x_nchw, w, b, gamma, beta, eps=1e-5, neg_slope=0.2):
    """Pure-JAX f32 reference (matches PyTorch DownBlock.forward in training mode)."""
    y = lax.conv_general_dilated(
        x_nchw.astype(jnp.float32), w.astype(jnp.float32),
        window_strides=(2, 2), padding=((1, 1), (1, 1)),
        dimension_numbers=("NCHW", "OIHW", "NCHW"))
    y = y + b.reshape(1, -1, 1, 1)
    mean = jnp.mean(y, axis=(0, 2, 3), keepdims=True)
    var = jnp.mean((y - mean) ** 2, axis=(0, 2, 3), keepdims=True)
    z = (y - mean) * lax.rsqrt(var + eps)
    z = z * gamma.reshape(1, -1, 1, 1) + beta.reshape(1, -1, 1, 1)
    return jnp.where(z >= 0, z, neg_slope * z)


if __name__ == "__main__":
    key = jax.random.PRNGKey(0)
    kx, kw, kb, kg, kbe = jax.random.split(key, 5)

    N, Cin, H, W = 2, 4, 16, 16
    Cout = 8

    x = jax.random.normal(kx, (N, Cin, H, W), dtype=jnp.float32)
    w = 0.1 * jax.random.normal(kw, (Cout, Cin, 3, 3), dtype=jnp.float32)
    b = 0.1 * jax.random.normal(kb, (Cout,), dtype=jnp.float32)
    gamma = 1.0 + 0.1 * jax.random.normal(kg, (Cout,), dtype=jnp.float32)
    beta = 0.1 * jax.random.normal(kbe, (Cout,), dtype=jnp.float32)

    out = jax.block_until_ready(down_block_forward(x, w, b, gamma, beta))
    ref = jax.block_until_ready(_reference(x, w, b, gamma, beta))

    assert out.shape == (N, Cout, H // 2, W // 2), out.shape
    # bf16 MXU operands (f32 accumulation) + bf16 output store vs the f32 reference.
    err = float(jnp.max(jnp.abs(out - ref)))
    assert err < 6e-2, err

    print("KERNEL_OK")
</pallas_src>

<mosaic_0001>
module attributes {stable_mosaic.version = 11 : i64} {
  func.func @_stats_kernel(%arg0: i32, %arg1: i32, %arg2: memref<128x48xbf16, #tpu.memory_space<vmem>>, %arg3: memref<48x128xbf16, #tpu.memory_space<vmem>>, %arg4: memref<1x1x128xf32, #tpu.memory_space<vmem>>, %arg5: memref<1x1x128xf32, #tpu.memory_space<vmem>>) attributes {dimension_semantics = [#tpu.dimension_semantics<parallel>, #tpu.dimension_semantics<arbitrary>], iteration_bounds = array<i64: 2, 1>, scalar_prefetch = 0 : i64, scratch_operands = 0 : i64, tpu.core_type = #tpu.core_type<tc>, window_params = [{transform_indices = @transform_0, window_bounds = array<i64: 128, 48>}, {pipeline_mode = #tpu.pipeline_mode<synchronous>, transform_indices = @transform_1, window_bounds = array<i64: 48, 128>}, {transform_indices = @transform_2, window_bounds = array<i64: 1, 1, 128>}, {transform_indices = @transform_3, window_bounds = array<i64: 1, 1, 128>}]} {
    %c0 = arith.constant 0 : index
    %c0_0 = arith.constant 0 : index
    %0 = vector.load %arg2[%c0, %c0_0] : memref<128x48xbf16, #tpu.memory_space<vmem>>, vector<128x48xbf16>
    %c0_1 = arith.constant 0 : index
    %c0_2 = arith.constant 0 : index
    %1 = vector.load %arg3[%c0_1, %c0_2] : memref<48x128xbf16, #tpu.memory_space<vmem>>, vector<48x128xbf16>
    %cst = arith.constant dense<0.000000e+00> : vector<128x128xf32>
    %2 = tpu.matmul %0, %1, %cst {dimension_numbers = #tpu.dot_dimension_numbers<[1], [0], [0], [1], [0, 0, 1, 1], [], []>} : vector<128x48xbf16>, vector<48x128xbf16>, vector<128x128xf32> -> vector<128x128xf32>
    %c0_i32 = arith.constant 0 : i32
    %3 = arith.cmpi eq, %arg1, %c0_i32 : i32
    %4 = arith.extui %3 : i1 to i32
    %c0_i32_3 = arith.constant 0 : i32
    %5 = arith.cmpi ne, %4, %c0_i32_3 : i32
    scf.if %5 {
      %cst_18 = arith.constant 0.000000e+00 : f32
      %23 = vector.broadcast %cst_18 : f32 to vector<1x128xf32>
      %c0_19 = arith.constant 0 : index
      %c0_20 = arith.constant 0 : index
      %c0_21 = arith.constant 0 : index
      %24 = vector.load %arg4[%c0_19, %c0_20, %c0_21] : memref<1x1x128xf32, #tpu.memory_space<vmem>>, vector<1x1x128xf32>
      %25 = vector.shape_cast %24 : vector<1x1x128xf32> to vector<1x128xf32>
      %26 = vector.shape_cast %23 : vector<1x128xf32> to vector<1x1x128xf32>
      tpu.vector_store %arg4[%c0_19, %c0_20, %c0_21], %26 {strides = array<i32>} : memref<1x1x128xf32, #tpu.memory_space<vmem>>, vector<1x1x128xf32>,
      %cst_22 = arith.constant 0.000000e+00 : f32
      %27 = vector.broadcast %cst_22 : f32 to vector<1x128xf32>
      %c0_23 = arith.constant 0 : index
      %c0_24 = arith.constant 0 : index
      %c0_25 = arith.constant 0 : index
      %28 = vector.load %arg5[%c0_23, %c0_24, %c0_25] : memref<1x1x128xf32, #tpu.memory_space<vmem>>, vector<1x1x128xf32>
      %29 = vector.shape_cast %28 : vector<1x1x128xf32> to vector<1x128xf32>
      %30 = vector.shape_cast %27 : vector<1x128xf32> to vector<1x1x128xf32>
      tpu.vector_store %arg5[%c0_23, %c0_24, %c0_25], %30 {strides = array<i32>} : memref<1x1x128xf32, #tpu.memory_space<vmem>>, vector<1x1x128xf32>,
    } else {
    }
    %c0_4 = arith.constant 0 : index
    %c0_5 = arith.constant 0 : index
    %c0_6 = arith.constant 0 : index
    %6 = vector.load %arg4[%c0_4, %c0_5, %c0_6] : memref<1x1x128xf32, #tpu.memory_space<vmem>>, vector<1x1x128xf32>
    %7 = vector.shape_cast %6 : vector<1x1x128xf32> to vector<1x128xf32>
    %cst_7 = arith.constant dense<0.000000e+00> : vector<128xf32>
    %8 = vector.multi_reduction <add>, %2, %cst_7 [0] : vector<128x128xf32> to vector<128xf32>
    %9 = vector.shape_cast %8 : vector<128xf32> to vector<1x128xf32>
    %10 = arith.addf %7, %9 : vector<1x128xf32>
    %c0_8 = arith.constant 0 : index
    %c0_9 = arith.constant 0 : index
    %c0_10 = arith.constant 0 : index
    %11 = vector.load %arg4[%c0_8, %c0_9, %c0_10] : memref<1x1x128xf32, #tpu.memory_space<vmem>>, vector<1x1x128xf32>
    %12 = vector.shape_cast %11 : vector<1x1x128xf32> to vector<1x128xf32>
    %13 = vector.shape_cast %10 : vector<1x128xf32> to vector<1x1x128xf32>
    tpu.vector_store %arg4[%c0_8, %c0_9, %c0_10], %13 {strides = array<i32>} : memref<1x1x128xf32, #tpu.memory_space<vmem>>, vector<1x1x128xf32>,
    %c0_11 = arith.constant 0 : index
    %c0_12 = arith.constant 0 : index
    %c0_13 = arith.constant 0 : index
    %14 = vector.load %arg5[%c0_11, %c0_12, %c0_13] : memref<1x1x128xf32, #tpu.memory_space<vmem>>, vector<1x1x128xf32>
    %15 = vector.shape_cast %14 : vector<1x1x128xf32> to vector<1x128xf32>
    %16 = arith.mulf %2, %2 : vector<128x128xf32>
    %cst_14 = arith.constant dense<0.000000e+00> : vector<128xf32>
    %17 = vector.multi_reduction <add>, %16, %cst_14 [0] : vector<128x128xf32> to vector<128xf32>
    %18 = vector.shape_cast %17 : vector<128xf32> to vector<1x128xf32>
    %19 = arith.addf %15, %18 : vector<1x128xf32>
    %c0_15 = arith.constant 0 : index
    %c0_16 = arith.constant 0 : index
    %c0_17 = arith.constant 0 : index
    %20 = vector.load %arg5[%c0_15, %c0_16, %c0_17] : memref<1x1x128xf32, #tpu.memory_space<vmem>>, vector<1x1x128xf32>
    %21 = vector.shape_cast %20 : vector<1x1x128xf32> to vector<1x128xf32>
    %22 = vector.shape_cast %19 : vector<1x128xf32> to vector<1x1x128xf32>
    tpu.vector_store %arg5[%c0_15, %c0_16, %c0_17], %22 {strides = array<i32>} : memref<1x1x128xf32, #tpu.memory_space<vmem>>, vector<1x1x128xf32>,
    return
  }
  func.func @transform_0(%arg0: i32, %arg1: i32) -> (i32, i32) {
    %c1_i32 = arith.constant 1 : i32
    %0 = arith.muli %arg0, %c1_i32 : i32
    %1 = arith.addi %0, %arg1 : i32
    %c0_i32 = arith.constant 0 : i32
    %c0_i32_0 = arith.constant 0 : i32
    return %1, %c0_i32 : i32, i32
  }
  func.func @transform_1(%arg0: i32, %arg1: i32) -> (i32, i32) {
    %c0_i32 = arith.constant 0 : i32
    %c0_i32_0 = arith.constant 0 : i32
    %c0_i32_1 = arith.constant 0 : i32
    return %c0_i32, %c0_i32_0 : i32, i32
  }
  func.func @transform_2(%arg0: i32, %arg1: i32) -> (i32, i32, i32) {
    %c0_i32 = arith.constant 0 : i32
    %c0_i32_0 = arith.constant 0 : i32
    %c0_i32_1 = arith.constant 0 : i32
    return %arg0, %c0_i32, %c0_i32_0 : i32, i32, i32
  }
  func.func @transform_3(%arg0: i32, %arg1: i32) -> (i32, i32, i32) {
    %c0_i32 = arith.constant 0 : i32
    %c0_i32_0 = arith.constant 0 : i32
    %c0_i32_1 = arith.constant 0 : i32
    return %arg0, %c0_i32, %c0_i32_0 : i32, i32, i32
  }
}

</mosaic_0001>

<bundles_post_ra>
// kernel: tpu_custom_call.1
= control target key start
LH: loop header
LB: loop body
LE: loop exit
PB: predicated region body
PF: predicated region fallthrough
CT: control target
= control target key end

     0   :  { %9 = vsyncpa [#allocation3], 0  ;;  %s1039_s0 = inlined_call_operand.vmem [shape: bf16[256,48], index: 0, kind: input, shape index: {}]   ;;  %s1040_s1 = inlined_call_operand.vmem [shape: bf16[48,128], index: 1, kind: input, shape index: {}]   ;;  %s1041_s2 = inlined_call_operand.hbm [shape: f32[2,1,128], index: 2, kind: output, shape index: {0}]   ;;  %s1042_s3 = inlined_call_operand.hbm [shape: f32[2,1,128], index: 3, kind: output, shape index: {1}]  }
   0x1   :  { %11 = vsyncpa [#allocation3 + $0x1], 0 }
   0x2   :  { %12 = vsyncpa [#allocation5], 0 }
   0x3   :  { %14 = vsyncpa [#allocation5 + $0x1], 0  ;;  %s865_s12 = smov 0   ;;  %s867_s13 = smov 0  }
   0x4   :  { %s869_s14 = smov 0   ;;  %s871_s15 = smov 0  }
   0x5   :  { %s873_s16 = smov 0   ;;  %s875_s17 = smov 0  }
   0x6 LB: > { %s593_s18 = sadd.s32 4294967295, %s840_s17   ;;  %s594_s19 = sadd.s32 4294967294, %s840_s17   ;;  %s840_s17 = sphi %s875_s17, %s20_s17   ;;  %s836_s16 = sphi %s873_s16, %s1049_s16   ;;  %s832_s15 = sphi %s871_s15, %s1048_s15   ;;  %s828_s14 = sphi %s869_s14, %s1047_s14   ;;  %s824_s13 = sphi %s867_s13, %s1046_s13   ;;  %s820_s12 = sphi %s865_s12, %s1045_s12  }
   0x7   : > { %s32_s20 = sadd.s32 1, %s836_s16  ;;  %s88_s21 = sadd.s32 1, %s828_s14 }
   0x8   : > { %p34_p0 = scmp.ge.s32.totalorder %s32_s20, 2  ;;  %p98_p1 = scmp.ne.s32.totalorder %s828_s14, %s824_s13 }
   0x9   : > { %p99_p2 = scmp.eq.s32.totalorder %s593_s18, 1  ;;  %p104_p3 = scmp.ne.s32.totalorder %s824_s13, %s820_s12 }
   0xa   : > { %s1051_s20 = smov (%p34_p0, %s32_s20), 0  ;;  %p105_p5 = scmp.eq.s32.totalorder %s594_s19, 1 }
   0xb   : > { %p903_p4 = por %p99_p2, %p98_p1  ;;  %s85_s23 = ssub.s32 %s836_s16, %s1051_s20 }
   0xc   : > { %p597_p6 = scmp.ge.s32.totalorder %s840_s17, 1  ;;  %p86_p7 = scmp.eq.s32.totalorder %s85_s23, 0 }
   0xd   : > { %p910_p8 = por %p105_p5, %p104_p3  ;;  %p163_p9 = scmp.lt.s32.totalorder %s840_s17, 3 }
   0xe   : > { %s916_s25 = scalar_select %p86_p7, %s828_s14, %s88_s21  }
   0xf   : > { %p164_p10 = pnand %p597_p6, %p163_p9 }
  0x10   : > { %s921_s28 = sshll.u32 (!%p164_p10), %s832_s15, 4  ;;  %s943_s11 = sand.u32 (!%p164_p10), 1, %s824_s13  }
  0x11   : > { %167 = sbr.rel (%p164_p10) target bundleno = 313 (0x139), region = 28  ;;  %p193_p11 = scmp.lt.s32.totalorder (!%p164_p10), %s921_s28, 31 }
  0x12   : > { %s946_s15 = scalar_lea.vmem (!%p164_p10), [#allocation2], %s943_s11  ;;  %s950_s18 = scalar_lea.vmem (!%p164_p10), [#allocation4], %s943_s11 }
  0x13   : > { %s489_s19 = sshll.u32 (!%p164_p10), %s946_s15, 4  ;;  %s502_s21 = sshll.u32 (!%p164_p10), %s950_s18, 4  ;;  %s963_s19 = int_to_ptr.vmem [resolvable:$true] %s489_s19  ;;  %s972_s21 = int_to_ptr.vmem [resolvable:$true] %s502_s21 }
  0x14   : > { %s961_s27 = scalar_lea.hbm (!%p164_p10), %s1041_s2, %s921_s28  ;;  %s473_s5 = scalar_lea.sflag (!%p164_p10), [#allocation3], %s943_s11 }
  0x15   : > { %s734_s6 = scalar_lea.vmem (!%p164_p10), %s963_s19, 16 }
  0x16   : > { %v723_v0 = vld [vmem:[%s1040_s1 + $0x10] sm:$0xff]   ;;  %v724_v1 = vld [vmem:[%s1040_s1 + $0x8] sm:$0xff]   ;;  %s194_s4 = scalar_select %p193_p11, %s921_s28, 31  ;;  %v725_v2 = vld [vmem:[%s1040_s1] sm:$0xff]   ;;  %vm280_vm0 = vcmask 392192   ;;  %v842_v11 = vmov 0.0  }
  0x17   : > { %634 = vmatprep.subr.bf16.mxu0 %v723_v0  ;;  %656 = vmatprep.subr.bf16.mxu1 %v723_v0  ;;  %406 = vst [vmem:[%s946_s15] sm:$0x1] %v842_v11  ;;  %407 = vst [vmem:[%s950_s18] sm:$0x1] %v842_v11  ;;  %p735_p12 = scmp.ne.s32.totalorder %s963_s19, %s734_s6 }
  0x18   : > { %635 = vmatpush3.bf16.msra.mxu0 %v723_v0  ;;  %659 = vmatpush3.bf16.msra.mxu1 %v723_v0  ;;  %s599_s7 = sshll.u32 %s194_s4, 2  ;;  %s970_s4 = scalar_lea.hbm %s1042_s3, %s921_s28 }
  0x19   : > { %636 = vmatprep.subr.bf16.mxu0 %v724_v1  ;;  %657 = vmatprep.subr.bf16.mxu1 %v724_v1  ;;  %s196_s10 = scalar_lea.vmem %s1039_s0, %s599_s7  ;;  %p736_p13 = pnand %p735_p12, %p903_p4 }
  0x1a   : > { %v726_v3 = vld [vmem:[%s196_s10] sm:$0xff]   ;;  %v727_v4 = vld [vmem:[%s196_s10 + $0x8] sm:$0xff]   ;;  %v728_v5 = vld [vmem:[%s196_s10 + $0x10] sm:$0xff]   ;;  %s843_s7 = smov [#allocation2]  }
  0x1b   : > { %640 = vmatprep.mubr.msk.bf16.mxu0 %vm280_vm0, %v726_v3  ;;  %v730_v6 = vld [vmem:[%s196_s10 + $0x20] sm:$0xff]   ;;  %v731_v7 = vld [vmem:[%s196_s10 + $0x28] sm:$0xff]   ;;  %v732_v8 = vld [vmem:[%s196_s10 + $0x30] sm:$0xff]   ;;  %p737_p0 = pneg %p736_p13  ;;  %s738_s8 = sshll.u32 %s843_s7, 4  ;;  %s739_s8 = int_to_ptr.vmem [resolvable:$false] %s738_s8 }
  0x1c   : > { %637 = vmatpush3.bf16.msra.mxu0 %v724_v1  ;;  %660 = vmatpush3.bf16.msra.mxu1 %v724_v1  ;;  %v729_v9 = vld [vmem:[%s196_s10 + $0x18] sm:$0xff]   ;;  %s740_s9 = scalar_lea.vmem %s739_s8, 32  ;;  %p741_p1 = scmp.lt.s32.totalorder %s963_s19, %s739_s8 }
  0x1d   : > { %638 = vmatprep.subr.bf16.mxu0 %v725_v2  ;;  %658 = vmatprep.subr.bf16.mxu1 %v725_v2  ;;  %v733_v10 = vld [vmem:[%s196_s10 + $0x38] sm:$0xff]   ;;  %p742_p2 = scmp.lt.s32.totalorder %s740_s9, %s734_s6 }
  0x1e   : > { %648 = vmatprep.mubr.msk.bf16.mxu1 %vm280_vm0, %v730_v6 }
  0x1f   : > { %p743_p3 = por %p742_p2, %p741_p1 }
  0x20   : > { %639 = vmatpush3.bf16.msra.mxu0 %v725_v2  ;;  %661 = vmatpush3.bf16.msra.mxu1 %v725_v2 }
  0x21   : > { %p744_p5 = pnand %p743_p3, %p737_p0 }
  0x23   : > { %641 = vmatmul.mubr.msk.bf16.vlgmr.msra.gmra.mxu0 %vm280_vm0, %v727_v4  ;;  %649 = vmatmul.mubr.msk.bf16.vlgmr.msra.gmra.mxu1 %vm280_vm0, %v731_v7 }
  0x24   : > { %644 = vmatprep.mubr.msk.bf16.mxu0 %vm280_vm0, %v728_v5  ;;  %652 = vmatprep.mubr.msk.bf16.mxu1 %vm280_vm0, %v732_v8 }
  0x2b   : > { %645 = vmatmul.mubr.msk.bf16.gmra.mxu0 %vm280_vm0, %v729_v9  ;;  %653 = vmatmul.mubr.msk.bf16.gmra.mxu1 %vm280_vm0, %v733_v10 }
  0xe3   : > { %v642_v12 = vpop.f32.mrf.mxu0  ;;  %v650_v13 = vpop.f32.mrf.mxu1 }
  0xe4   : > { %v435_v23 = vmul.f32 %v642_v12, %v642_v12  ;;  %v443_v54 = vmul.f32 %v650_v13, %v650_v13 }
  0xe5   : > { %v339_v14 = vpop.f32.mrf.mxu0  ;;  %v371_v16 = vpop.f32.mrf.mxu1 }
  0xe6   : > { %v433_v18 = vmul.f32 %v339_v14, %v339_v14  ;;  %v441_v47 = vmul.f32 %v371_v16, %v371_v16 }
  0xe7   : > { %v643_v15 = vpop.f32.mrf.mxu0  ;;  %v651_v22 = vpop.f32.mrf.mxu1 }
  0xe8   : > { %v436_v27 = vmul.f32 %v643_v15, %v643_v15  ;;  %v444_v57 = vmul.f32 %v651_v22, %v651_v22 }
  0xe9   : > { %v342_v17 = vpop.f32.mrf.mxu0  ;;  %v374_v31 = vpop.f32.mrf.mxu1 }
  0xea   : > { %v409_v19 = vadd.f32 %v342_v17, %v339_v14  ;;  %v434_v20 = vmul.f32 %v342_v17, %v342_v17  ;;  %v442_v51 = vmul.f32 %v374_v31, %v374_v31 }
  0xeb   : > { %v646_v21 = vpop.f32.mrf.mxu0  ;;  %v654_v39 = vpop.f32.mrf.mxu1 }
  0xec   : > { %v410_v24 = vadd.f32 %v642_v12, %v409_v19  ;;  %v449_v25 = vadd.f32 %v434_v20, %v433_v18  ;;  %v439_v40 = vmul.f32 %v646_v21, %v646_v21  ;;  %v447_v3 = vmul.f32 %v654_v39, %v654_v39  ;;  %v408_v19 = vld [vmem:[%s946_s15] sm:$0x1] }
  0xed   : > { %v355_v26 = vpop.f32.mrf.mxu0  ;;  %v387_v46 = vpop.f32.mrf.mxu1 }
  0xee   : > { %v450_v28 = vadd.f32 %v449_v25, %v435_v23  ;;  %v411_v29 = vadd.f32 %v643_v15, %v410_v24  ;;  %v437_v33 = vmul.f32 %v355_v26, %v355_v26  ;;  %v445_v62 = vmul.f32 %v387_v46, %v387_v46 }
  0xef   : > { %v647_v30 = vpop.f32.mrf.mxu0  ;;  %v655_v53 = vpop.f32.mrf.mxu1 }
  0xf0   : > { %v412_v32 = vadd.f32 %v411_v29, %v355_v26  ;;  %v451_v34 = vadd.f32 %v450_v28, %v436_v27  ;;  %v440_v43 = vmul.f32 %v647_v30, %v647_v30  ;;  %v448_v6 = vmul.f32 %v655_v53, %v655_v53 }
  0xf1   : > { %v358_v35 = vpop.f32.mrf.mxu0  ;;  %v390_v60 = vpop.f32.mrf.mxu1 }
  0xf2   : > { %v452_v36 = vadd.f32 %v451_v34, %v437_v33  ;;  %v413_v37 = vadd.f32 %v412_v32, %v358_v35  ;;  %v438_v38 = vmul.f32 %v358_v35, %v358_v35  ;;  %v446_v2 = vmul.f32 %v390_v60, %v390_v60 }
  0xf4   : > { %v414_v41 = vadd.f32 %v646_v21, %v413_v37  ;;  %v453_v42 = vadd.f32 %v452_v36, %v438_v38 }
  0xf6   : > { %v415_v44 = vadd.f32 %v647_v30, %v414_v41  ;;  %v454_v45 = vadd.f32 %v453_v42, %v439_v40 }
  0xf8   : > { %v455_v48 = vadd.f32 %v454_v45, %v440_v43  ;;  %v416_v49 = vadd.f32 %v415_v44, %v371_v16 }
  0xfa   : > { %v417_v50 = vadd.f32 %v416_v49, %v374_v31  ;;  %v456_v52 = vadd.f32 %v455_v48, %v441_v47 }
  0xfc   : > { %v418_v55 = vadd.f32 %v650_v13, %v417_v50  ;;  %v457_v56 = vadd.f32 %v456_v52, %v442_v51 }
  0xfe   : > { %v458_v58 = vadd.f32 %v457_v56, %v443_v54  ;;  %v419_v59 = vadd.f32 %v651_v22, %v418_v55  ;;  %v432_v22 = vld [vmem:[%s950_s18] sm:$0x1] }
 0x100   : > { %v420_v61 = vadd.f32 %v419_v59, %v387_v46  ;;  %v459_v63 = vadd.f32 %v458_v58, %v444_v57 }
 0x102   : > { %v460_v0 = vadd.f32 %v459_v63, %v445_v62  ;;  %v421_v1 = vadd.f32 %v420_v61, %v390_v60 }
 0x104   : > { %v422_v4 = vadd.f32 %v654_v39, %v421_v1  ;;  %v461_v5 = vadd.f32 %v460_v0, %v446_v2 }
 0x106   : > { %v423_v7 = vadd.f32 %v655_v53, %v422_v4  ;;  %v462_v8 = vadd.f32 %v461_v5, %v447_v3 }
 0x108   : > { %v424_v9 = vrot.slane %v423_v7, 4  ;;  %v463_v10 = vadd.f32 %v462_v8, %v448_v6 }
 0x10a   : > { %v425_v11 = vadd.f32 %v424_v9, %v423_v7  ;;  %v464_v12 = vrot.slane %v463_v10, 4 }
 0x10c   : > { %v426_v13 = vrot.slane %v425_v11, 2  ;;  %v465_v14 = vadd.f32 %v464_v12, %v463_v10 }
 0x10e   : > { %v427_v15 = vadd.f32 %v426_v13, %v425_v11  ;;  %v466_v16 = vrot.slane %v465_v14, 2 }
 0x110   : > { %v428_v17 = vrot.slane %v427_v15, 1  ;;  %v467_v18 = vadd.f32 %v466_v16, %v465_v14 }
 0x112   : > { %v429_v20 = vadd.f32 %v428_v17, %v427_v15  ;;  %v468_v21 = vrot.slane %v467_v18, 1 }
 0x114   : > { %v430_v23 = vadd.f32 %v429_v20, %v408_v19  ;;  %v469_v24 = vadd.f32 %v468_v21, %v467_v18 }
 0x116   : > { %431 = vst [vmem:[%s946_s15] sm:$0x1] %v430_v23  ;;  %v470_v25 = vadd.f32 %v469_v24, %v432_v22 }
 0x117   : > { %747 = shalt.err (!%p744_p5)
}
 0x118   : > { %s748_s28 = scalar_lea.hbm %s961_s27, 16  ;;  %s752_s23 = scalar_lea.hbm %s1041_s2, 32 }
 0x119   : > { %p749_p6 = scmp.ne.s32.totalorder %s961_s27, %s748_s28  ;;  %p753_p10 = scmp.lt.s32.totalorder %s961_s27, %s1041_s2 }
 0x11a   : > { %p754_p11 = scmp.lt.s32.totalorder %s752_s23, %s748_s28 }
 0x11b   : > { %p750_p7 = pnand %p749_p6, %p903_p4 }
 0x11c   : > { %p755_p12 = por %p754_p11, %p753_p10 }
 0x11d   : > { %p751_p9 = pneg %p750_p7 }
 0x11f   : > { %p756_p13 = pnand %p755_p12, %p751_p9 }
 0x121   : > { %759 = shalt.err (!%p756_p13)
}
 0x122   : > { %662 = dma.vmem_to_hbm [thread:$0]  (%p903_p4), %s963_s19, 16, %s961_s27, %s473_s5   ;;  %471 = vst [vmem:[%s950_s18] sm:$0x1] %v470_v25 }
 0x123   : > { %s477_s30 = scalar_lea.sflag [#allocation5], %s943_s11  ;;  %s760_s6 = scalar_lea.vmem %s972_s21, 16 }
 0x124   : > { %p761_p0 = scmp.ne.s32.totalorder %s972_s21, %s760_s6  ;;  %s844_s7 = smov [#allocation4]  }
 0x125   : > { %s764_s8 = sshll.u32 %s844_s7, 4  ;;  %s765_s8 = int_to_ptr.vmem [resolvable:$false] %s764_s8 }
 0x126   : > { %p762_p1 = pnand %p761_p0, %p903_p4  ;;  %s766_s9 = scalar_lea.vmem %s765_s8, 32 }
 0x127   : > { %p767_p3 = scmp.lt.s32.totalorder %s972_s21, %s765_s8  ;;  %p768_p5 = scmp.lt.s32.totalorder %s766_s9, %s760_s6 }
 0x128   : > { %p763_p2 = pneg %p762_p1 }
 0x129   : > { %p769_p6 = por %p768_p5, %p767_p3 }
 0x12b   : > { %p770_p7 = pnand %p769_p6, %p763_p2 }
 0x12d   : > { %773 = shalt.err (!%p770_p7)
}
 0x12e   : > { %s774_s18 = scalar_lea.hbm %s970_s4, 16  ;;  %s778_s27 = scalar_lea.hbm %s1042_s3, 32 }
 0x12f   : > { %p775_p9 = scmp.ne.s32.totalorder %s970_s4, %s774_s18  ;;  %p779_p12 = scmp.lt.s32.totalorder %s970_s4, %s1042_s3 }
 0x130   : > { %p780_p13 = scmp.lt.s32.totalorder %s778_s27, %s774_s18 }
 0x131   : > { %p776_p10 = pnand %p775_p9, %p903_p4 }
 0x132   : > { %p781_p0 = por %p780_p13, %p779_p12 }
 0x133   : > { %p777_p11 = pneg %p776_p10 }
 0x135   : > { %p782_p1 = pnand %p781_p0, %p777_p11 }
 0x137   : > { %785 = shalt.err (!%p782_p1)
}
 0x138   : > { %663 = dma.vmem_to_hbm [thread:$0]  (%p903_p4), %s972_s21, 16, %s970_s4, %s477_s30  }
 0x139 PF: > { %p673_p2 = scmp.ge.s32.totalorder %s840_s17, 2  ;;  %s514_s10 = sand.u32 1, %s820_s12  }
 0x13a   : > { %s515_s15 = scalar_lea.sflag [#allocation3], %s514_s10 }
 0x13b   : > { %p667_p3 = pnand %p673_p2, %p910_p8 }
 0x13d   : > { %p668_p5 = pneg %p667_p3 }
 0x13f   : > { %811 = dma.done.wait (%p668_p5), %s515_s15, 16  }
 0x140   : > { %813 = vsyncadd (%p668_p5), %s515_s15, 4294967280  ;;  %s523_s23 = scalar_lea.sflag [#allocation5], %s514_s10 }
 0x141   : > { %815 = dma.done.wait (%p668_p5), %s523_s23, 16  }
 0x142   : > { %817 = vsyncadd (%p668_p5), %s523_s23, 4294967280  ;;  %s20_s17 = sadd.s32 1, %s840_s17   ;;  %s1045_s12 = smov %s824_s13 }
 0x143   : > { %p17_p6 = scmp.ge.s32.totalorder %s20_s17, 4   ;;  %s1046_s13 = smov %s828_s14 }
 0x144   : > { %s1047_s14 = smov %s916_s25  ;;  %s1048_s15 = smov %s836_s16 }
 0x145   : > { %s1049_s16 = smov %s1051_s20  ;;  %19 = sbr.rel (!%p17_p6) target bundleno = 6 (0x6), region = 84 }
 0x14a   :  { %527 = vsyncpa [#allocation3], 1 }
 0x14b   :  { %529 = vsyncpa [#allocation3 + $0x1], 1 }
 0x14c   :  { %530 = vsyncpa [#allocation5], 1 }
 0x14d   :  { %532 = vsyncpa [#allocation5 + $0x1], 1 }

</bundles_post_ra>
